<compile_context>
chip_gen: v7x
topology: tpu7x:2x2x1
jax: 0.10.0
libtpu: 0.0.40
codegen_flags: <defaults>
</compile_context>

<pallas_src>
import jax
import jax.numpy as jnp
from jax.experimental import pallas as pl
from jax.experimental.pallas import tpu as pltpu


def _round_up(x, m):
    return ((x + m - 1) // m) * m


# ---------------------------------------------------------------------------
# Kernels
# ---------------------------------------------------------------------------

def _ffn_kernel_resident(x_ref, w1_ref, b1_ref, w2_ref, b2_ref, o_ref):
    # Whole padded W1/W2 live in VMEM; grid is 1-D over row tiles only, so the
    # weight blocks have a constant index and are NOT re-DMA'd per row tile.
    # x_ref: (tm, Ep) bf16, w1_ref: (Ep, Fp) bf16, w2_ref: (Fp, Ep) bf16,
    # b1_ref: (1, Fp) f32, b2_ref: (1, Ep) f32, o_ref: (tm, Ep) out dtype.
    h = jnp.dot(x_ref[...], w1_ref[...], preferred_element_type=jnp.float32)
    h = h + b1_ref[...]
    h = h * jax.nn.sigmoid(h)                      # swish / SiLU in f32
    # TODO(synk): dropout / activation_dropout are identity at inference; not modeled.
    y = jnp.dot(h.astype(w2_ref.dtype), w2_ref[...],
                preferred_element_type=jnp.float32)
    o_ref[...] = (y + b2_ref[...]).astype(o_ref.dtype)


def _ffn_kernel_streamed(x_ref, w1_ref, b1_ref, w2_ref, b2_ref, o_ref, acc_ref):
    # F-chunked path for very large E*F: weights streamed in (Ep, tf)/(tf, Ep)
    # chunks along the "arbitrary" axis, f32 accumulator in VMEM scratch.
    kf = pl.program_id(1)

    @pl.when(kf == 0)
    def _init():
        acc_ref[...] = jnp.zeros_like(acc_ref)

    h = jnp.dot(x_ref[...], w1_ref[...], preferred_element_type=jnp.float32)
    h = h + b1_ref[...]
    h = h * jax.nn.sigmoid(h)
    acc_ref[...] += jnp.dot(h.astype(w2_ref.dtype), w2_ref[...],
                            preferred_element_type=jnp.float32)

    @pl.when(kf == pl.num_programs(1) - 1)
    def _finalize():
        o_ref[...] = (acc_ref[...] + b2_ref[...]).astype(o_ref.dtype)


# ---------------------------------------------------------------------------
# Host-side helpers
# ---------------------------------------------------------------------------

def prepare_ffn_params(w1, b1, w2, b2, *, weight_dtype=jnp.bfloat16):
    """Pad weights/biases to lane-dense (multiple-of-128) shapes and cast the
    matmul operands to bf16 ONCE. Call at model init, not per forward."""
    E, F = w1.shape
    Ep = _round_up(E, 128)
    Fp = _round_up(F, 128)
    w1p = jnp.pad(w1, ((0, Ep - E), (0, Fp - F))).astype(weight_dtype)
    w2p = jnp.pad(w2, ((0, Fp - F), (0, Ep - E))).astype(weight_dtype)
    b1p = jnp.pad(jnp.reshape(b1, (1, -1)), ((0, 0), (0, Fp - F))).astype(jnp.float32)
    b2p = jnp.pad(jnp.reshape(b2, (1, -1)), ((0, 0), (0, Ep - E))).astype(jnp.float32)
    return dict(w1=w1p, b1=b1p, w2=w2p, b2=b2p, E=E, F=F, Ep=Ep, Fp=Fp)


def _vmem_need_bytes(tm, Ep, Fp, tf, out_itemsize, resident):
    x_tile = tm * Ep * 2 * 2                      # bf16 x tile, double-buffered
    o_tile = tm * Ep * out_itemsize * 2           # output tile, double-buffered
    if resident:
        w = 2 * Ep * Fp * 2 * 2                   # W1 + W2 bf16 (2 buffers)
        h_tmp = tm * Fp * 4                       # f32 intermediate
        acc = 0
        bias = (Fp + Ep) * 4 * 2
    else:
        w = 2 * Ep * tf * 2 * 2                   # W1/W2 F-chunks (2 buffers each)
        h_tmp = tm * tf * 4
        acc = tm * Ep * 4                         # f32 accumulator scratch
        bias = (tf + Ep) * 4 * 2
    return x_tile + o_tile + w + h_tmp + acc + bias


def _pick_tm(M, tm_req, fits):
    """Largest row tile (multiple of 16; >=256 candidates are multiples of
    128/256 for clean MXU waves) that covers M and fits the VMEM budget."""
    cap = _round_up(M, 16)
    if cap <= 256 and cap <= tm_req and fits(cap):
        return cap                                # single tile for small M
    for cand in (1024, 896, 768, 640, 512, 384, 256, 128, 64, 32, 16):
        if cand <= tm_req and cand <= cap and fits(cand):
            return cand
    return 16


def positionwise_ffn_prepared(x, params, *, tm=1024, tf=512, out_dtype=None,
                              even_row_tiles=True):
    """x: (T, B, E). params: output of prepare_ffn_params. Returns (T, B, E)."""
    T, B, E = x.shape
    assert E == params["E"], "embed_dim mismatch"
    Ep, Fp = params["Ep"], params["Fp"]
    M = T * B
    out_dtype = out_dtype if out_dtype is not None else x.dtype
    out_itemsize = jnp.dtype(out_dtype).itemsize

    # Weights-resident when the (double-buffered) bf16 weights comfortably fit
    # in VMEM for all row tiles. Typical Conformer sizes (E=512, F=2048 -> 4 MiB)
    # trivially qualify on v5e/v6e/v7x.
    resident = (2 * Ep * Fp * 2 * 2) <= (16 << 20)

    if resident:
        tf = Fp
    else:
        tf = max(128, min((tf // 128) * 128, Fp))
        while Fp % tf:                            # tf must divide Fp
            tf -= 128

    vmem_budget = 40 << 20                        # headroom even on v7x (64 MiB/TC)

    def fits(cand_tm):
        return _vmem_need_bytes(cand_tm, Ep, Fp, tf, out_itemsize, resident) <= vmem_budget

    tm = _pick_tm(M, tm, fits)

    Mp = _round_up(M, tm)
    n_tiles = Mp // tm
    if even_row_tiles and n_tiles > 1 and (n_tiles % 2):
        # v7x shards the "parallel" row axis across 2 TensorCores; keep it even.
        Mp += tm
        n_tiles += 1

    # Guarded pad + cast of the activations only (weights were prepped once).
    x2d = x.reshape(M, E)
    if Mp != M or Ep != E:
        x2d = jnp.pad(x2d, ((0, Mp - M), (0, Ep - E)))
    if x2d.dtype != jnp.bfloat16:
        x2d = x2d.astype(jnp.bfloat16)

    need = _vmem_need_bytes(tm, Ep, Fp, tf, out_itemsize, resident)
    vmem_limit = int(min(max(int(need * 1.25) + (2 << 20), 16 << 20), 64 << 20))

    weight_bytes = 2 * Ep * Fp * 2                # bf16 W1 + W2
    weight_stream_factor = 1 if resident else n_tiles
    cost = pl.CostEstimate(
        flops=4 * Mp * Ep * Fp,                   # two matmuls: 2*M*N*K each
        transcendentals=2 * Mp * Fp,              # sigmoid ~ exp + recip
        bytes_accessed=(Mp * Ep * 2               # x (bf16)
                        + weight_bytes * weight_stream_factor
                        + (Fp + Ep) * 4           # biases
                        + Mp * Ep * out_itemsize),
    )
    compiler_params = pltpu.CompilerParams(
        dimension_semantics=("parallel",) if resident else ("parallel", "arbitrary"),
        vmem_limit_bytes=vmem_limit,
    )

    if resident:
        out = pl.pallas_call(
            _ffn_kernel_resident,
            out_shape=jax.ShapeDtypeStruct((Mp, Ep), out_dtype),
            grid_spec=pltpu.PrefetchScalarGridSpec(
                num_scalar_prefetch=0,
                grid=(n_tiles,),
                in_specs=[
                    pl.BlockSpec((tm, Ep), lambda i: (i, 0)),   # x row tile
                    pl.BlockSpec((Ep, Fp), lambda i: (0, 0)),   # W1 (VMEM-resident)
                    pl.BlockSpec((1, Fp), lambda i: (0, 0)),    # b1
                    pl.BlockSpec((Fp, Ep), lambda i: (0, 0)),   # W2 (VMEM-resident)
                    pl.BlockSpec((1, Ep), lambda i: (0, 0)),    # b2
                ],
                out_specs=pl.BlockSpec((tm, Ep), lambda i: (i, 0)),
            ),
            compiler_params=compiler_params,
            cost_estimate=cost,
        )(x2d, params["w1"], params["b1"], params["w2"], params["b2"])
    else:
        out = pl.pallas_call(
            _ffn_kernel_streamed,
            out_shape=jax.ShapeDtypeStruct((Mp, Ep), out_dtype),
            grid_spec=pltpu.PrefetchScalarGridSpec(
                num_scalar_prefetch=0,
                grid=(n_tiles, Fp // tf),
                in_specs=[
                    pl.BlockSpec((tm, Ep), lambda i, k: (i, 0)),  # x row tile
                    pl.BlockSpec((Ep, tf), lambda i, k: (0, k)),  # W1 F-chunk
                    pl.BlockSpec((1, tf), lambda i, k: (0, k)),   # b1 F-chunk
                    pl.BlockSpec((tf, Ep), lambda i, k: (k, 0)),  # W2 F-chunk
                    pl.BlockSpec((1, Ep), lambda i, k: (0, 0)),   # b2
                ],
                out_specs=pl.BlockSpec((tm, Ep), lambda i, k: (i, 0)),
                scratch_shapes=[pltpu.VMEM((tm, Ep), jnp.float32)],
            ),
            compiler_params=compiler_params,
            cost_estimate=cost,
        )(x2d, params["w1"], params["b1"], params["w2"], params["b2"])

    return out[:M, :E].reshape(T, B, E)


def positionwise_ffn(x, w1, b1, w2, b2, **kwargs):
    """One-shot convenience wrapper (preps weights per call; prefer preparing
    once with prepare_ffn_params + positionwise_ffn_prepared on the hot path)."""
    return positionwise_ffn_prepared(x, prepare_ffn_params(w1, b1, w2, b2), **kwargs)


def _ref_ffn(x, w1, b1, w2, b2):
    h = x @ w1 + b1.reshape(-1)
    h = h * jax.nn.sigmoid(h)
    return h @ w2 + b2.reshape(-1)


if __name__ == "__main__":
    key = jax.random.PRNGKey(0)
    T, B, E, FF = 8, 2, 32, 64  # seq=8, batch=2, embed_dim=32, ffn_embed_dim=64

    k0, k1, k2, k3, k4 = jax.random.split(key, 5)
    x = jax.random.normal(k0, (T, B, E), dtype=jnp.float32)

    # Deterministic "Linear" params (math layout: W1 (E,FF), W2 (FF,E)).
    bound1 = 1.0 / (E ** 0.5)
    bound2 = 1.0 / (FF ** 0.5)
    w1 = jax.random.uniform(k1, (E, FF), minval=-bound1, maxval=bound1, dtype=jnp.float32)
    b1 = jax.random.uniform(k2, (1, FF), minval=-bound1, maxval=bound1, dtype=jnp.float32)
    w2 = jax.random.uniform(k3, (FF, E), minval=-bound2, maxval=bound2, dtype=jnp.float32)
    b2 = jax.random.uniform(k4, (1, E), minval=-bound2, maxval=bound2, dtype=jnp.float32)

    # Prepare (pad + bf16-cast) the weights ONCE, as at model init.
    params = prepare_ffn_params(w1, b1, w2, b2)

    y = positionwise_ffn_prepared(x, params)
    y = jax.block_until_ready(y)

    # Reference in f32; kernel runs bf16 matmul operands with f32 accumulation,
    # so compare with a bf16-appropriate tolerance.
    y_ref = _ref_ffn(x.reshape(-1, E), w1, b1, w2, b2).reshape(T, B, E)
    assert jnp.allclose(y, y_ref, atol=2e-2, rtol=2e-2), "mismatch vs reference"

    print("KERNEL_OK")
</pallas_src>

<mosaic_0001>
module attributes {stable_mosaic.version = 11 : i64} {
  func.func @_ffn_kernel_resident(%arg0: i32, %arg1: memref<16x128xbf16, #tpu.memory_space<vmem>>, %arg2: memref<128x128xbf16, #tpu.memory_space<vmem>>, %arg3: memref<1x128xf32, #tpu.memory_space<vmem>>, %arg4: memref<128x128xbf16, #tpu.memory_space<vmem>>, %arg5: memref<1x128xf32, #tpu.memory_space<vmem>>, %arg6: memref<16x128xf32, #tpu.memory_space<vmem>>) attributes {dimension_semantics = [#tpu.dimension_semantics<parallel>], iteration_bounds = array<i64: 1>, scalar_prefetch = 0 : i64, scratch_operands = 0 : i64, tpu.core_type = #tpu.core_type<tc>, window_params = [{transform_indices = @transform_0, window_bounds = array<i64: 16, 128>}, {pipeline_mode = #tpu.pipeline_mode<synchronous>, transform_indices = @transform_1, window_bounds = array<i64: 128, 128>}, {pipeline_mode = #tpu.pipeline_mode<synchronous>, transform_indices = @transform_2, window_bounds = array<i64: 1, 128>}, {pipeline_mode = #tpu.pipeline_mode<synchronous>, transform_indices = @transform_3, window_bounds = array<i64: 128, 128>}, {pipeline_mode = #tpu.pipeline_mode<synchronous>, transform_indices = @transform_4, window_bounds = array<i64: 1, 128>}, {transform_indices = @transform_5, window_bounds = array<i64: 16, 128>}]} {
    %c0 = arith.constant 0 : index
    %c0_0 = arith.constant 0 : index
    %0 = vector.load %arg1[%c0, %c0_0] : memref<16x128xbf16, #tpu.memory_space<vmem>>, vector<16x128xbf16>
    %c0_1 = arith.constant 0 : index
    %c0_2 = arith.constant 0 : index
    %1 = vector.load %arg2[%c0_1, %c0_2] : memref<128x128xbf16, #tpu.memory_space<vmem>>, vector<128x128xbf16>
    %cst = arith.constant dense<0.000000e+00> : vector<16x128xf32>
    %2 = tpu.matmul %0, %1, %cst {dimension_numbers = #tpu.dot_dimension_numbers<[1], [0], [0], [1], [0, 0, 1, 1], [], []>} : vector<16x128xbf16>, vector<128x128xbf16>, vector<16x128xf32> -> vector<16x128xf32>
    %c0_3 = arith.constant 0 : index
    %c0_4 = arith.constant 0 : index
    %3 = vector.load %arg3[%c0_3, %c0_4] : memref<1x128xf32, #tpu.memory_space<vmem>>, vector<1x128xf32>
    %4 = vector.broadcast %3 : vector<1x128xf32> to vector<16x128xf32>
    %5 = arith.addf %2, %4 : vector<16x128xf32>
    %6 = arith.negf %5 : vector<16x128xf32>
    %7 = math.exp %6 : vector<16x128xf32>
    %cst_5 = arith.constant 1.000000e+00 : f32
    %8 = vector.broadcast %cst_5 : f32 to vector<16x128xf32>
    %9 = arith.addf %8, %7 : vector<16x128xf32>
    %10 = arith.divf %8, %9 : vector<16x128xf32>
    %11 = arith.mulf %5, %10 : vector<16x128xf32>
    %12 = arith.truncf %11 : vector<16x128xf32> to vector<16x128xbf16>
    %c0_6 = arith.constant 0 : index
    %c0_7 = arith.constant 0 : index
    %13 = vector.load %arg4[%c0_6, %c0_7] : memref<128x128xbf16, #tpu.memory_space<vmem>>, vector<128x128xbf16>
    %cst_8 = arith.constant dense<0.000000e+00> : vector<16x128xf32>
    %14 = tpu.matmul %12, %13, %cst_8 {dimension_numbers = #tpu.dot_dimension_numbers<[1], [0], [0], [1], [0, 0, 1, 1], [], []>} : vector<16x128xbf16>, vector<128x128xbf16>, vector<16x128xf32> -> vector<16x128xf32>
    %c0_9 = arith.constant 0 : index
    %c0_10 = arith.constant 0 : index
    %15 = vector.load %arg5[%c0_9, %c0_10] : memref<1x128xf32, #tpu.memory_space<vmem>>, vector<1x128xf32>
    %16 = vector.broadcast %15 : vector<1x128xf32> to vector<16x128xf32>
    %17 = arith.addf %14, %16 : vector<16x128xf32>
    %c0_11 = arith.constant 0 : index
    %c0_12 = arith.constant 0 : index
    %18 = vector.load %arg6[%c0_11, %c0_12] : memref<16x128xf32, #tpu.memory_space<vmem>>, vector<16x128xf32>
    tpu.vector_store %arg6[%c0_11, %c0_12], %17 {strides = array<i32>} : memref<16x128xf32, #tpu.memory_space<vmem>>, vector<16x128xf32>,
    return
  }
  func.func @transform_0(%arg0: i32) -> (i32, i32) {
    %c0_i32 = arith.constant 0 : i32
    %c0_i32_0 = arith.constant 0 : i32
    return %arg0, %c0_i32 : i32, i32
  }
  func.func @transform_1(%arg0: i32) -> (i32, i32) {
    %c0_i32 = arith.constant 0 : i32
    %c0_i32_0 = arith.constant 0 : i32
    %c0_i32_1 = arith.constant 0 : i32
    return %c0_i32, %c0_i32_0 : i32, i32
  }
  func.func @transform_2(%arg0: i32) -> (i32, i32) {
    %c0_i32 = arith.constant 0 : i32
    %c0_i32_0 = arith.constant 0 : i32
    %c0_i32_1 = arith.constant 0 : i32
    return %c0_i32, %c0_i32_0 : i32, i32
  }
  func.func @transform_3(%arg0: i32) -> (i32, i32) {
    %c0_i32 = arith.constant 0 : i32
    %c0_i32_0 = arith.constant 0 : i32
    %c0_i32_1 = arith.constant 0 : i32
    return %c0_i32, %c0_i32_0 : i32, i32
  }
  func.func @transform_4(%arg0: i32) -> (i32, i32) {
    %c0_i32 = arith.constant 0 : i32
    %c0_i32_0 = arith.constant 0 : i32
    %c0_i32_1 = arith.constant 0 : i32
    return %c0_i32, %c0_i32_0 : i32, i32
  }
  func.func @transform_5(%arg0: i32) -> (i32, i32) {
    %c0_i32 = arith.constant 0 : i32
    %c0_i32_0 = arith.constant 0 : i32
    return %arg0, %c0_i32 : i32, i32
  }
}

</mosaic_0001>

<bundles_post_ra>
// kernel: tpu_custom_call.1
= control target key start
LH: loop header
LB: loop body
LE: loop exit
PB: predicated region body
PF: predicated region fallthrough
CT: control target
= control target key end

     0   :  { %10 = vsyncpa [#allocation3], 0  ;;  %s648_s0 = inlined_call_operand.hbm [shape: bf16[16,128], index: 0, kind: input, shape index: {}]   ;;  %s649_s1 = inlined_call_operand.hbm [shape: bf16[128,128], index: 1, kind: input, shape index: {}]   ;;  %s650_s2 = inlined_call_operand.vmem [shape: f32[1,128], index: 2, kind: input, shape index: {}]   ;;  %s651_s3 = inlined_call_operand.hbm [shape: bf16[128,128], index: 3, kind: input, shape index: {}]   ;;  %s652_s4 = inlined_call_operand.vmem [shape: f32[1,128], index: 4, kind: input, shape index: {}]   ;;  %s653_s5 = inlined_call_operand.hbm [shape: f32[16,128], index: 5, kind: output, shape index: {}]  }
   0x1   :  { %11 = vsyncpa [#allocation6], 0 }
   0x2   :  { %12 = vsyncpa [#allocation4], 0  ;;  %s538_s18 = smov [#allocation5]   ;;  %s539_s20 = smov [#allocation2]  }
   0x3   :  { %s30_s19 = sshll.u32 %s538_s18, 4  ;;  %s18_s21 = sshll.u32 %s539_s20, 4  ;;  %s31_s19 = int_to_ptr.vmem [resolvable:$true] %s30_s19  ;;  %s578_s21 = int_to_ptr.vmem [resolvable:$true] %s18_s21 }
   0x4   :  { %s444_s24 = scalar_lea.hbm %s649_s1, 1024 }
   0x5   :  { %p445_p0 = scmp.ne.s32.totalorder %s649_s1, %s444_s24  ;;  %p448_p1 = scmp.lt.u32.totalorder %s444_s24, %s649_s1 }
   0x7   :  { %p450_p2 = pnand %p448_p1, %p445_p0 }
   0x9   :  { %453 = shalt.err (!%p450_p2)
}
   0xa   :  { %s454_s29 = scalar_lea.vmem %s31_s19, 1024  ;;  %p459_p4 = scmp.lt.s32.totalorder %s31_s19, %s31_s19 }
   0xb   :  { %p455_p3 = scmp.ne.s32.totalorder %s31_s19, %s454_s29  ;;  %p460_p5 = scmp.lt.s32.totalorder %s454_s29, %s454_s29 }
   0xd   :  { %p461_p6 = por %p460_p5, %p459_p4 }
   0xf   :  { %p462_p7 = pnand %p461_p6, %p455_p3 }
  0x11   :  { %465 = shalt.err (!%p462_p7)
}
  0x12   :  { %s540_s30 = smov 64   ;;  %s541_s6 = smov 4  }
  0x13   :  { %36 = dma.hbm_to_vmem [thread:$0]  %s649_s1, 1024, %s31_s19, [#allocation6], %s540_s30, %s540_s30, %s541_s6  }
  0x14   :  { %s466_s11 = scalar_lea.hbm %s648_s0, 128 }
  0x15   :  { %p467_p8 = scmp.ne.s32.totalorder %s648_s0, %s466_s11  ;;  %p470_p9 = scmp.lt.u32.totalorder %s466_s11, %s648_s0 }
  0x17   :  { %p472_p10 = pnand %p470_p9, %p467_p8 }
  0x19   :  { %475 = shalt.err (!%p472_p10)
}
  0x1a   :  { %s476_s16 = scalar_lea.vmem %s578_s21, 128  ;;  %p481_p12 = scmp.lt.s32.totalorder %s578_s21, %s578_s21 }
  0x1b   :  { %p477_p11 = scmp.ne.s32.totalorder %s578_s21, %s476_s16  ;;  %p482_p13 = scmp.lt.s32.totalorder %s476_s16, %s476_s16 }
  0x1d   :  { %p483_p0 = por %p482_p13, %p481_p12 }
  0x1f   :  { %p484_p1 = pnand %p483_p0, %p477_p11 }
  0x21   :  { %487 = shalt.err (!%p484_p1)
}
  0x22   :  { %24 = dma.hbm_to_vmem [thread:$0]  %s648_s0, 128, %s578_s21, [#allocation3], %s540_s30, %s540_s30, %s541_s6  }
  0x23   :  { %s542_s18 = smov [#allocation7]   ;;  %s488_s23 = scalar_lea.hbm %s651_s3, 1024 }
  0x24   :  { %s44_s19 = sshll.u32 %s542_s18, 4  ;;  %p489_p2 = scmp.ne.s32.totalorder %s651_s3, %s488_s23  ;;  %s45_s19 = int_to_ptr.vmem [resolvable:$true] %s44_s19 }
  0x25   :  { %p492_p3 = scmp.lt.u32.totalorder %s488_s23, %s651_s3 }
  0x27   :  { %p494_p4 = pnand %p492_p3, %p489_p2 }
  0x29   :  { %497 = shalt.err (!%p494_p4)
}
  0x2a   :  { %s498_s28 = scalar_lea.vmem %s45_s19, 1024  ;;  %p503_p6 = scmp.lt.s32.totalorder %s45_s19, %s45_s19 }
  0x2b   :  { %p499_p5 = scmp.ne.s32.totalorder %s45_s19, %s498_s28  ;;  %p504_p7 = scmp.lt.s32.totalorder %s498_s28, %s498_s28 }
  0x2d   :  { %p505_p8 = por %p504_p7, %p503_p6 }
  0x2f   :  { %p506_p9 = pnand %p505_p8, %p499_p5 }
  0x31   :  { %509 = shalt.err (!%p506_p9)
}
  0x32   :  { %50 = dma.hbm_to_vmem [thread:$0]  %s651_s3, 1024, %s45_s19, [#allocation6], %s540_s30, %s540_s30, %s541_s6  }
  0x33   :  { %532 = dma.done.wait [#allocation3], 128  }
  0x34   :  { %533 = vsyncadd [#allocation3], 4294967168 }
  0x35   :  { %534 = dma.done.wait [#allocation6], 2048  }
  0x36   :  { %535 = vsyncadd [#allocation6], 4294965248  ;;  %v543_v0 = vmov 0.0   ;;  %vm544_vm0 = vmmov 0   ;;  %v419_v1 = vld [vmem:[#allocation5] sm:$0xff]   ;;  %v420_v2 = vld [vmem:[#allocation5 + $0x8] sm:$0xff]  }
  0x37   :  { %369 = vmatprep.subr.bf16.mxu0 %v543_v0  ;;  %385 = vmatprep.mubr.msk.bf16.mxu0 %vm544_vm0, %v543_v0  ;;  %v421_v3 = vld [vmem:[#allocation5 + $0x10] sm:$0xff]   ;;  %v422_v4 = vld [vmem:[#allocation5 + $0x18] sm:$0xff]   ;;  %v423_v5 = vld [vmem:[#allocation5 + $0x20] sm:$0xff]   ;;  %s545_s6 = smov [#allocation8]  }
  0x38   :  { %389 = vmatprep.subr.bf16.mxu1 %v543_v0  ;;  %405 = vmatprep.mubr.msk.bf16.mxu1 %vm544_vm0, %v543_v0  ;;  %v424_v6 = vld [vmem:[#allocation5 + $0x28] sm:$0xff]   ;;  %v425_v7 = vld [vmem:[#allocation5 + $0x30] sm:$0xff]   ;;  %v426_v8 = vld [vmem:[#allocation5 + $0x38] sm:$0xff]   ;;  %s317_s7 = sshll.u32 %s545_s6, 4  ;;  %s318_s7 = int_to_ptr.vmem [resolvable:$true] %s317_s7 }
  0x39   :  { %370 = vmatpush3.bf16.msra.mxu0 %v419_v1  ;;  %v427_v9 = vld [vmem:[#allocation2] sm:$0xff]   ;;  %v428_v10 = vld [vmem:[#allocation7] sm:$0xff]   ;;  %v429_v11 = vld [vmem:[#allocation7 + $0x8] sm:$0xff]   ;;  %s510_s8 = scalar_lea.vmem %s318_s7, 256  ;;  %p515_p11 = scmp.lt.s32.totalorder %s318_s7, %s318_s7 }
  0x3a   :  { %371 = vmatprep.subr.bf16.mxu0 %v543_v0  ;;  %390 = vmatpush3.bf16.msra.mxu1 %v428_v10  ;;  %v430_v12 = vld [vmem:[#allocation7 + $0x10] sm:$0xff]   ;;  %v431_v13 = vld [vmem:[#allocation7 + $0x18] sm:$0xff]   ;;  %v432_v14 = vld [vmem:[#allocation7 + $0x20] sm:$0xff]   ;;  %p511_p10 = scmp.ne.s32.totalorder %s318_s7, %s510_s8  ;;  %p516_p12 = scmp.lt.s32.totalorder %s510_s8, %s510_s8 }
  0x3b   :  { %391 = vmatprep.subr.bf16.mxu1 %v543_v0  ;;  %v433_v15 = vld [vmem:[#allocation7 + $0x28] sm:$0xff]   ;;  %v434_v16 = vld [vmem:[#allocation7 + $0x30] sm:$0xff]   ;;  %v435_v17 = vld [vmem:[#allocation7 + $0x38] sm:$0xff]  }
  0x3c   :  { %v330_v18 = vld [vmem:[%s650_s2] ss:$0 sm:$0xff]  ;;  %p517_p13 = por %p516_p12, %p515_p11 }
  0x3d   :  { %372 = vmatpush3.bf16.msra.mxu0 %v420_v2  ;;  %v342_v36 = vld [vmem:[%s652_s4] ss:$0 sm:$0xff] }
  0x3e   :  { %373 = vmatprep.subr.bf16.mxu0 %v543_v0  ;;  %392 = vmatpush3.bf16.msra.mxu1 %v429_v11  ;;  %p518_p0 = pnand %p517_p13, %p511_p10 }
  0x3f   :  { %393 = vmatprep.subr.bf16.mxu1 %v543_v0 }
  0x41   :  { %374 = vmatpush3.bf16.msra.mxu0 %v421_v3 }
  0x42   :  { %375 = vmatprep.subr.bf16.mxu0 %v543_v0  ;;  %394 = vmatpush3.bf16.msra.mxu1 %v430_v12 }
  0x43   :  { %395 = vmatprep.subr.bf16.mxu1 %v543_v0 }
  0x45   :  { %376 = vmatpush3.bf16.msra.mxu0 %v422_v4 }
  0x46   :  { %377 = vmatprep.subr.bf16.mxu0 %v543_v0  ;;  %396 = vmatpush3.bf16.msra.mxu1 %v431_v13 }
  0x47   :  { %397 = vmatprep.subr.bf16.mxu1 %v543_v0 }
  0x49   :  { %378 = vmatpush3.bf16.msra.mxu0 %v423_v5 }
  0x4a   :  { %379 = vmatprep.subr.bf16.mxu0 %v543_v0  ;;  %398 = vmatpush3.bf16.msra.mxu1 %v432_v14 }
  0x4b   :  { %399 = vmatprep.subr.bf16.mxu1 %v543_v0 }
  0x4d   :  { %380 = vmatpush3.bf16.msra.mxu0 %v424_v6 }
  0x4e   :  { %381 = vmatprep.subr.bf16.mxu0 %v543_v0  ;;  %400 = vmatpush3.bf16.msra.mxu1 %v433_v15 }
  0x4f   :  { %401 = vmatprep.subr.bf16.mxu1 %v543_v0 }
  0x51   :  { %382 = vmatpush3.bf16.msra.mxu0 %v425_v7 }
  0x52   :  { %383 = vmatprep.subr.bf16.mxu0 %v543_v0  ;;  %402 = vmatpush3.bf16.msra.mxu1 %v434_v16 }
  0x53   :  { %403 = vmatprep.subr.bf16.mxu1 %v543_v0 }
  0x55   :  { %384 = vmatpush3.bf16.msra.mxu0 %v426_v8 }
  0x56   :  { %404 = vmatpush3.bf16.msra.mxu1 %v435_v17 }
  0x58   :  { %386 = vmatmul.mubr.bf16.vlgmr.msra.gmra.mrb[0].mxu0 %v427_v9 }
 0x12b   :  { %v176_v19 = vpop.f32.mrb[0].mxu0 }
 0x12c   :  { %v177_v20 = vadd.f32 %v330_v18, %v176_v19  ;;  %v387_v21 = vpop.f32.mrb[1].mxu0 }
 0x12d   :  { %v179_v22 = vpop.f32.mrb[2].mxu0 }
 0x12e   :  { %v340_v23 = vmul.f32 -1.442695, %v177_v20  ;;  %v180_v24 = vadd.f32 %v330_v18, %v179_v22  ;;  %v388_v25 = vpop.f32.mrb[3].mxu0 }
 0x130   :  { %436 = vpow2.f32 %v340_v23  ;;  %v341_v26 = vmul.f32 -1.442695, %v180_v24 }
 0x132   :  { %438 = vpow2.f32 %v341_v26 }
 0x13a   :  { %v437_v27 = vpop.eup %436 }
 0x13b   :  { %v189_v28 = vadd.f32 1.0, %v437_v27 }
 0x13c   :  { %v439_v29 = vpop.eup %438 }
 0x13d   :  { %440 = vrcp.f32 %v189_v28  ;;  %v190_v30 = vadd.f32 1.0, %v439_v29 }
 0x13f   :  { %442 = vrcp.f32 %v190_v30 }
 0x147   :  { %v441_v31 = vpop.eup %440 }
 0x148   :  { %v195_v33 = vmul.f32 %v441_v31, %v177_v20 }
 0x149   :  { %v443_v32 = vpop.eup %442 }
 0x14a   :  { %v196_v34 = vmul.f32 %v443_v32, %v180_v24 }
 0x14c   :  { %v197_v35 = vpack.c.bf16 %v196_v34, %v195_v33 }
 0x14e   :  { %406 = vmatmul.mubr.bf16.vlgmr.msra.gmra.mrb[0].mxu1 %v197_v35 }
 0x221   :  { %v303_v37 = vpop.f32.mrb[0].mxu1 }
 0x222   :  { %v304_v38 = vadd.f32 %v342_v36, %v303_v37  ;;  %v407_v39 = vpop.f32.mrb[1].mxu1 }
 0x223   :  { %v306_v40 = vpop.f32.mrb[2].mxu1 }
 0x224   :  { %310 = vst [vmem:[#allocation8] sm:$0xff] %v304_v38  ;;  %v307_v41 = vadd.f32 %v342_v36, %v306_v40  ;;  %v408_v42 = vpop.f32.mrb[3].mxu1 }
 0x226   :  { %311 = vst [vmem:[#allocation8 + $0x8] sm:$0xff] %v307_v41 }
 0x227   :  { %521 = shalt.err (!%p518_p0)
}
 0x228   :  { %s522_s10 = scalar_lea.hbm %s653_s5, 256 }
 0x229   :  { %p523_p1 = scmp.ne.s32.totalorder %s653_s5, %s522_s10  ;;  %p526_p2 = scmp.lt.u32.totalorder %s522_s10, %s653_s5 }
 0x22b   :  { %p528_p3 = pnand %p526_p2, %p523_p1 }
 0x22d   :  { %531 = shalt.err (!%p528_p3)
}
 0x22e   :  { %s546_s15 = smov 128   ;;  %s547_s16 = smov 8  }
 0x22f   :  { %323 = dma.vmem_to_hbm [thread:$0]  %s318_s7, 256, %s653_s5, [#allocation4], %s546_s15, %s546_s15, %s547_s16  }
 0x230   :  { %536 = dma.done.wait [#allocation4], 256  }
 0x231   :  { %537 = vsyncadd [#allocation4], 4294967040 }
 0x232   :  { %327 = vsyncpa [#allocation3], 1 }
 0x233   :  { %328 = vsyncpa [#allocation6], 1 }
 0x234   :  { %329 = vsyncpa [#allocation4], 1 }

</bundles_post_ra>
